<compile_context>
chip_gen: v7x
topology: tpu7x:2x2x1
jax: 0.10.0
libtpu: 0.0.40
codegen_flags: <defaults>
</compile_context>

<pallas_src>
import functools

import jax
import jax.numpy as jnp
from jax import lax
from jax.experimental import pallas as pl
from jax.experimental.pallas import tpu as pltpu

_LN10 = 2.302585092994046


def _soft_scale(p, soft_margin):
    """Elementwise soft-margin scale s(p); algebraic forms that lower cleanly."""
    if soft_margin == "s_adaptive":
        # 1 / (1 + (p/(1-p))**-2)  ==  p^2 / (p^2 + (1-p)^2)   (single divide)
        q = 1.0 - p
        return (p * p) / (p * p + q * q)
    elif soft_margin == "exponential":
        return (jnp.exp(p * _LN10) - 1.0) / 9.0   # == (10 ** p - 1) / 9
    raise ValueError(f"Unknown soft_margin: {soft_margin}")


def _contrastive_kernel(*refs, margin, mode, soft_margin, tm, n):
    if soft_margin is None:
        scores_ref, dcol_ref, drow_ref = refs[:3]
        probs_ref = None
        out_refs = refs[3:]
    else:
        scores_ref, dcol_ref, drow_ref, probs_ref = refs[:4]
        out_refs = refs[4:]

    scores = scores_ref[...].astype(jnp.float32)        # (TM, N) row tile
    d1 = dcol_ref[...].astype(jnp.float32)              # (TM, 1): scores[r, r]
    d2 = drow_ref[...].astype(jnp.float32)              # (1,  N): scores[c, c]

    if soft_margin is None:
        m = jnp.float32(margin)
    else:
        p = probs_ref[...].astype(jnp.float32)
        m = jnp.float32(margin) * _soft_scale(p, soft_margin)

    cost_s = jnp.maximum(m + scores - d1, 0.0)           # image -> caption hinge
    cost_im = jnp.maximum(m + scores - d2, 0.0)          # caption -> image hinge

    groups = tm // 8                                     # TM is a multiple of 8

    if mode == "max_violation":
        # max semantics needs the diagonal zeroed (matches masked_fill_(eye, 0)).
        i = pl.program_id(0)
        row_g = lax.broadcasted_iota(jnp.int32, (tm, n), 0) + i * tm
        col_g = lax.broadcasted_iota(jnp.int32, (tm, n), 1)
        eye = row_g == col_g
        cost_s = jnp.where(eye, 0.0, cost_s)
        cost_im = jnp.where(eye, 0.0, cost_im)
        row_out_ref, col_out_ref = out_refs
        row_out_ref[...] = jnp.max(cost_s, axis=1, keepdims=True)        # (TM, 1)
        # Fold only groups of 8 sublanes (VPU maxes); wrapper finishes 8-way.
        col_out_ref[...] = jnp.max(cost_im.reshape(groups, 8, n), axis=0)  # (8, N)
    elif mode == "warmup":
        # Total loss only needs sum over everything: fold both hinges into one
        # lane-dense (8, N) partial; no per-row output, no eye mask (analytic
        # relu(margin_ii) correction happens in the wrapper).
        (col_out_ref,) = out_refs
        both = cost_s + cost_im
        col_out_ref[...] = jnp.sum(both.reshape(groups, 8, n), axis=0)     # (8, N)
    else:  # eval_loss
        row_out_ref, col_out_ref = out_refs
        row_out_ref[...] = jnp.sum(cost_s, axis=1, keepdims=True)          # (TM, 1)
        col_out_ref[...] = jnp.sum(cost_im.reshape(groups, 8, n), axis=0)  # (8, N)


def _vmem_limit_bytes():
    """Scoped-VMEM budget: ~64 MiB on v5e/v6e (128 MiB physical), ~48 MiB on
    v7x (64 MiB physical).  Falls back to a safe default off-TPU."""
    try:
        cap = int(pltpu.get_tpu_info().vmem_capacity_bytes)
    except Exception:
        cap = 128 * 1024 * 1024
    return min(64 * 1024 * 1024, (cap * 3) // 4)


def _pick_tm(n_pad, itemsizes, vmem_limit, tile_rows=None):
    """Row-tile size: biggest sublane-aligned tile within the VMEM budget,
    capped so the grid keeps >=2 steps whenever N is splittable."""
    sub = 16 if min(itemsizes) < 4 else 8     # bf16/fp8 sublane packing
    if tile_rows is not None:
        assert n_pad % tile_rows == 0
        assert tile_rows == n_pad or tile_rows % sub == 0
        return tile_rows
    # Per-row VMEM footprint of one grid step: double-buffered native-dtype
    # input blocks plus ~4 f32 (TM, N) temporaries (upcast scores, margin,
    # cost_s, cost_im).
    row_bytes = n_pad * (2 * sum(itemsizes) + 4 * 4)
    budget = (vmem_limit * 3) // 4
    max_rows = max(sub, budget // row_bytes)
    # Keep the 'parallel' axis splittable across 2 TensorCores (v7x); one
    # extra ~0.35us grid step is noise on single-core chips.
    cap = n_pad // 2 if n_pad % (2 * sub) == 0 else n_pad
    limit = min(max_rows, cap)
    if limit >= n_pad:
        return n_pad
    tm = sub                                   # sub always divides n_pad
    c = 2 * sub
    while c <= limit:
        if n_pad % c == 0:
            tm = c
        c += sub
    return tm


def contrastive_loss(scores, *, margin=0.0, hard_negative="none",
                     probs=None, soft_margin=None, tile_rows=None):
    """Pallas implementation of ContrastiveLoss.forward."""
    if hard_negative not in ("warmup", "max_violation", "eval_loss"):
        raise ValueError("Invalid hard negative type")

    n = scores.shape[0]
    use_probs = probs is not None and soft_margin is not None
    if use_probs and soft_margin not in ("s_adaptive", "exponential"):
        raise ValueError(f"Unknown soft_margin: {soft_margin}")

    # Native dtype streams into the kernel; only the O(N) diagonal is f32 here.
    itemsizes = [jnp.dtype(scores.dtype).itemsize]
    if use_probs:
        itemsizes.append(jnp.dtype(probs.dtype).itemsize)
    sub = 16 if min(itemsizes) < 4 else 8

    diag = jnp.diagonal(scores).astype(jnp.float32)        # O(N)

    # Pad N up to a sublane multiple; padded entries contribute exactly 0:
    # scores_pad = -1e30 (so relu(...)=0), diag_pad = +1e30, probs_pad = 0.5.
    n_pad = ((n + sub - 1) // sub) * sub
    if n_pad != n:
        pad = n_pad - n
        scores = jnp.pad(scores, ((0, pad), (0, pad)), constant_values=-1e30)
        diag = jnp.pad(diag, (0, pad), constant_values=1e30)
        if use_probs:
            probs = jnp.pad(probs, ((0, pad), (0, pad)), constant_values=0.5)

    diag_col = diag.reshape(n_pad, 1)
    diag_row = diag.reshape(1, n_pad)

    vmem_limit = _vmem_limit_bytes()
    tm = _pick_tm(n_pad, itemsizes, vmem_limit, tile_rows)
    num_tiles = n_pad // tm

    kern = functools.partial(
        _contrastive_kernel, margin=float(margin), mode=hard_negative,
        soft_margin=soft_margin if use_probs else None, tm=tm, n=n_pad)

    in_specs = [
        pl.BlockSpec((tm, n_pad), lambda i: (i, 0)),   # scores row tile (native dtype)
        pl.BlockSpec((tm, 1), lambda i: (i, 0)),       # diag of this tile's rows
        pl.BlockSpec((1, n_pad), lambda i: (0, 0)),    # full diag (per column)
    ]
    args = [scores, diag_col, diag_row]
    if use_probs:
        in_specs.append(pl.BlockSpec((tm, n_pad), lambda i: (i, 0)))
        args.append(probs)

    col_shape = jax.ShapeDtypeStruct((8 * num_tiles, n_pad), jnp.float32)
    col_spec = pl.BlockSpec((8, n_pad), lambda i: (i, 0))
    if hard_negative == "warmup":
        out_shape = (col_shape,)
        out_specs = (col_spec,)
    else:
        out_shape = (jax.ShapeDtypeStruct((n_pad, 1), jnp.float32), col_shape)
        out_specs = (pl.BlockSpec((tm, 1), lambda i: (i, 0)), col_spec)

    outs = pl.pallas_call(
        kern,
        grid=(num_tiles,),
        in_specs=in_specs,
        out_specs=out_specs,
        out_shape=out_shape,
        compiler_params=pltpu.CompilerParams(
            dimension_semantics=("parallel",),
            vmem_limit_bytes=vmem_limit),
    )(*args)

    if hard_negative == "max_violation":
        row_out, col_out = outs
        col_max = col_out.reshape(num_tiles, 8, n_pad).max(axis=(0, 1))
        return row_out.sum() + col_max.sum()

    # Sum modes: the kernel left the diagonal in; subtract its analytic
    # contribution relu(margin_ii) for both cost_s (rows) and cost_im (cols).
    if use_probs:
        p_diag = jnp.diagonal(probs)[:n].astype(jnp.float32)
        m_diag = float(margin) * _soft_scale(p_diag, soft_margin)
    else:
        m_diag = jnp.full((n,), float(margin), dtype=jnp.float32)
    diag_corr = jnp.maximum(m_diag, 0.0)                   # (N,)
    inv_n = 1.0 / n

    if hard_negative == "warmup":
        (col_out,) = outs
        return (col_out.sum() - 2.0 * diag_corr.sum()) * inv_n

    # eval_loss: per-example vector
    row_out, col_out = outs
    col_sum = col_out.reshape(num_tiles, 8, n_pad).sum(axis=(0, 1))
    row_vec = row_out.reshape(n_pad)[:n]
    return (row_vec + col_sum[:n] - 2.0 * diag_corr) * inv_n


def _reference(scores, margin, hard_negative, probs=None, soft_margin=None):
    """Plain-JAX reference mirroring the PyTorch forward (f32 math)."""
    scores = scores.astype(jnp.float32)
    n = scores.shape[0]
    diag = jnp.diag(scores).reshape(n, 1)
    d1 = jnp.broadcast_to(diag, (n, n))
    d2 = jnp.broadcast_to(diag.T, (n, n))
    if probs is None or soft_margin is None:
        m = margin
    elif soft_margin == "s_adaptive":
        m = margin * (1.0 / (1.0 + jnp.power(probs / (1.0 - probs), -2.0)))
    elif soft_margin == "exponential":
        m = margin * ((jnp.power(10.0, probs) - 1.0) / 9.0)
    cost_s = jnp.maximum(m + scores - d1, 0.0)
    cost_im = jnp.maximum(m + scores - d2, 0.0)
    eye = jnp.eye(n, dtype=bool)
    cost_s = jnp.where(eye, 0.0, cost_s)
    cost_im = jnp.where(eye, 0.0, cost_im)
    if hard_negative == "warmup":
        return cost_s.mean(1).sum() + cost_im.mean(0).sum()
    if hard_negative == "max_violation":
        return cost_s.max(1).sum() + cost_im.max(0).sum()
    return cost_s.mean(1) + cost_im.mean(0)


if __name__ == "__main__":
    key = jax.random.PRNGKey(0)
    MARGIN = 0.2  # ContrastiveLoss(margin=0.2); module has no learned parameters

    k1, k2, k3, k4 = jax.random.split(key, 4)

    # --- small N, single-tile path ---
    N = 8
    scores = jax.random.normal(k1, (N, N), dtype=jnp.float32)
    probs = jax.random.uniform(k2, (N, N), dtype=jnp.float32,
                               minval=0.05, maxval=0.95)

    out_warm = contrastive_loss(scores, margin=MARGIN, hard_negative="warmup")
    out_max = contrastive_loss(scores, margin=MARGIN, hard_negative="max_violation")
    out_eval = contrastive_loss(scores, margin=MARGIN, hard_negative="eval_loss")
    out_soft_e = contrastive_loss(scores, margin=MARGIN, hard_negative="warmup",
                                  probs=probs, soft_margin="exponential")
    out_soft_a = contrastive_loss(scores, margin=MARGIN, hard_negative="eval_loss",
                                  probs=probs, soft_margin="s_adaptive")

    # --- multi-tile path (grid > 1, forced small tile to exercise pipelining) ---
    N2 = 64
    scores2 = jax.random.normal(k3, (N2, N2), dtype=jnp.float32)
    out2_warm = contrastive_loss(scores2, margin=MARGIN,
                                 hard_negative="warmup", tile_rows=16)
    out2_max = contrastive_loss(scores2, margin=MARGIN,
                                hard_negative="max_violation", tile_rows=16)
    out2_eval = contrastive_loss(scores2, margin=MARGIN,
                                 hard_negative="eval_loss", tile_rows=16)

    # --- bf16 input streamed natively (no wrapper f32 copy), auto tile pick ---
    scores_bf = scores2.astype(jnp.bfloat16)
    out_bf_warm = contrastive_loss(scores_bf, margin=MARGIN, hard_negative="warmup")
    out_bf_max = contrastive_loss(scores_bf, margin=MARGIN,
                                  hard_negative="max_violation")

    # --- N not a multiple of 8 -> padded path ---
    N3 = 12
    scores3 = jax.random.normal(k4, (N3, N3), dtype=jnp.float32)
    out3_warm = contrastive_loss(scores3, margin=MARGIN, hard_negative="warmup")
    out3_max = contrastive_loss(scores3, margin=MARGIN, hard_negative="max_violation")
    out3_eval = contrastive_loss(scores3, margin=MARGIN, hard_negative="eval_loss")

    jax.block_until_ready((out_warm, out_max, out_eval, out_soft_e, out_soft_a,
                           out2_warm, out2_max, out2_eval,
                           out_bf_warm, out_bf_max,
                           out3_warm, out3_max, out3_eval))

    # correctness check vs plain-JAX reference
    checks = [
        (out_warm, _reference(scores, MARGIN, "warmup")),
        (out_max, _reference(scores, MARGIN, "max_violation")),
        (out_eval, _reference(scores, MARGIN, "eval_loss")),
        (out_soft_e, _reference(scores, MARGIN, "warmup",
                                probs=probs, soft_margin="exponential")),
        (out_soft_a, _reference(scores, MARGIN, "eval_loss",
                                probs=probs, soft_margin="s_adaptive")),
        (out2_warm, _reference(scores2, MARGIN, "warmup")),
        (out2_max, _reference(scores2, MARGIN, "max_violation")),
        (out2_eval, _reference(scores2, MARGIN, "eval_loss")),
        (out_bf_warm, _reference(scores_bf, MARGIN, "warmup")),
        (out_bf_max, _reference(scores_bf, MARGIN, "max_violation")),
        (out3_warm, _reference(scores3, MARGIN, "warmup")),
        (out3_max, _reference(scores3, MARGIN, "max_violation")),
        (out3_eval, _reference(scores3, MARGIN, "eval_loss")),
    ]
    for got, want in checks:
        assert jnp.allclose(got, want, rtol=1e-4, atol=1e-4), (got, want)

    print("KERNEL_OK")
</pallas_src>

<mosaic_0001>
module attributes {stable_mosaic.version = 11 : i64} {
  func.func @_contrastive_kernel(%arg0: i32, %arg1: memref<8x8xf32, #tpu.memory_space<vmem>>, %arg2: memref<8x1xf32, #tpu.memory_space<vmem>>, %arg3: memref<1x8xf32, #tpu.memory_space<vmem>>, %arg4: memref<8x8xf32, #tpu.memory_space<vmem>>) attributes {dimension_semantics = [#tpu.dimension_semantics<parallel>], iteration_bounds = array<i64: 1>, scalar_prefetch = 0 : i64, scratch_operands = 0 : i64, tpu.core_type = #tpu.core_type<tc>, window_params = [{transform_indices = @transform_0, window_bounds = array<i64: 8, 8>}, {transform_indices = @transform_1, window_bounds = array<i64: 8, 1>}, {pipeline_mode = #tpu.pipeline_mode<synchronous>, transform_indices = @transform_2, window_bounds = array<i64: 1, 8>}, {transform_indices = @transform_3, window_bounds = array<i64: 8, 8>}]} {
    %c0 = arith.constant 0 : index
    %c0_0 = arith.constant 0 : index
    %0 = vector.load %arg1[%c0, %c0_0] : memref<8x8xf32, #tpu.memory_space<vmem>>, vector<8x8xf32>
    %c0_1 = arith.constant 0 : index
    %c0_2 = arith.constant 0 : index
    %1 = vector.load %arg2[%c0_1, %c0_2] : memref<8x1xf32, #tpu.memory_space<vmem>>, vector<8x1xf32>
    %c0_3 = arith.constant 0 : index
    %c0_4 = arith.constant 0 : index
    %2 = vector.load %arg3[%c0_3, %c0_4] : memref<1x8xf32, #tpu.memory_space<vmem>>, vector<1x8xf32>
    %cst = arith.constant 2.000000e-01 : f32
    %3 = vector.broadcast %cst : f32 to vector<8x8xf32>
    %4 = arith.addf %3, %0 : vector<8x8xf32>
    %5 = vector.broadcast %1 : vector<8x1xf32> to vector<8x8xf32>
    %6 = arith.subf %4, %5 : vector<8x8xf32>
    %cst_5 = arith.constant 0.000000e+00 : f32
    %7 = vector.broadcast %cst_5 : f32 to vector<8x8xf32>
    %8 = arith.maximumf %6, %7 : vector<8x8xf32>
    %cst_6 = arith.constant 2.000000e-01 : f32
    %9 = vector.broadcast %cst_6 : f32 to vector<8x8xf32>
    %10 = arith.addf %9, %0 : vector<8x8xf32>
    %11 = vector.broadcast %2 : vector<1x8xf32> to vector<8x8xf32>
    %12 = arith.subf %10, %11 : vector<8x8xf32>
    %cst_7 = arith.constant 0.000000e+00 : f32
    %13 = vector.broadcast %cst_7 : f32 to vector<8x8xf32>
    %14 = arith.maximumf %12, %13 : vector<8x8xf32>
    %15 = arith.addf %8, %14 : vector<8x8xf32>
    %16 = vector.shape_cast %15 : vector<8x8xf32> to vector<1x8x8xf32>
    %cst_8 = arith.constant dense<0.000000e+00> : vector<8x8xf32>
    %17 = vector.multi_reduction <add>, %16, %cst_8 [0] : vector<1x8x8xf32> to vector<8x8xf32>
    %c0_9 = arith.constant 0 : index
    %c0_10 = arith.constant 0 : index
    %18 = vector.load %arg4[%c0_9, %c0_10] : memref<8x8xf32, #tpu.memory_space<vmem>>, vector<8x8xf32>
    tpu.vector_store %arg4[%c0_9, %c0_10], %17 {strides = array<i32>} : memref<8x8xf32, #tpu.memory_space<vmem>>, vector<8x8xf32>,
    return
  }
  func.func @transform_0(%arg0: i32) -> (i32, i32) {
    %c0_i32 = arith.constant 0 : i32
    %c0_i32_0 = arith.constant 0 : i32
    return %arg0, %c0_i32 : i32, i32
  }
  func.func @transform_1(%arg0: i32) -> (i32, i32) {
    %c0_i32 = arith.constant 0 : i32
    %c0_i32_0 = arith.constant 0 : i32
    return %arg0, %c0_i32 : i32, i32
  }
  func.func @transform_2(%arg0: i32) -> (i32, i32) {
    %c0_i32 = arith.constant 0 : i32
    %c0_i32_0 = arith.constant 0 : i32
    %c0_i32_1 = arith.constant 0 : i32
    return %c0_i32, %c0_i32_0 : i32, i32
  }
  func.func @transform_3(%arg0: i32) -> (i32, i32) {
    %c0_i32 = arith.constant 0 : i32
    %c0_i32_0 = arith.constant 0 : i32
    return %arg0, %c0_i32 : i32, i32
  }
}

</mosaic_0001>

<bundles_post_ra>
// kernel: tpu_custom_call.1
= control target key start
LH: loop header
LB: loop body
LE: loop exit
PB: predicated region body
PF: predicated region fallthrough
CT: control target
= control target key end

     0   :  { %8 = vsyncpa [#allocation3], 0  ;;  %s263_s0 = inlined_call_operand.hbm [shape: f32[8,8], index: 0, kind: input, shape index: {}]   ;;  %s264_s1 = inlined_call_operand.hbm [shape: f32[8,1], index: 1, kind: input, shape index: {}]   ;;  %s265_s2 = inlined_call_operand.hbm [shape: f32[1,8], index: 2, kind: input, shape index: {}]   ;;  %s266_s3 = inlined_call_operand.hbm [shape: f32[8,8], index: 3, kind: output, shape index: {}]  }
   0x1   :  { %9 = vsyncpa [#allocation6], 0 }
   0x2   :  { %10 = vsyncpa [#allocation4], 0  ;;  %s190_s12 = smov [#allocation5]   ;;  %s191_s14 = smov [#allocation2]  }
   0x3   :  { %s27_s13 = sshll.u32 %s190_s12, 4  ;;  %s17_s15 = sshll.u32 %s191_s14, 4  ;;  %s28_s13 = int_to_ptr.vmem [resolvable:$true] %s27_s13  ;;  %s18_s15 = int_to_ptr.vmem [resolvable:$true] %s17_s15 }
   0x4   :  { %s96_s18 = scalar_lea.hbm %s264_s1, 128 }
   0x5   :  { %p97_p0 = scmp.ne.s32.totalorder %s264_s1, %s96_s18  ;;  %p100_p1 = scmp.lt.u32.totalorder %s96_s18, %s264_s1 }
   0x7   :  { %p102_p2 = pnand %p100_p1, %p97_p0 }
   0x9   :  { %105 = shalt.err (!%p102_p2)
}
   0xa   :  { %s106_s23 = scalar_lea.vmem %s28_s13, 128  ;;  %p111_p4 = scmp.lt.s32.totalorder %s28_s13, %s28_s13 }
   0xb   :  { %p107_p3 = scmp.ne.s32.totalorder %s28_s13, %s106_s23  ;;  %p112_p5 = scmp.lt.s32.totalorder %s106_s23, %s106_s23 }
   0xd   :  { %p113_p6 = por %p112_p5, %p111_p4 }
   0xf   :  { %p114_p7 = pnand %p113_p6, %p107_p3 }
  0x11   :  { %117 = shalt.err (!%p114_p7)
}
  0x12   :  { %30 = dma.hbm_to_vmem [thread:$0]  %s264_s1, 128, %s28_s13, [#allocation6]  }
  0x13   :  { %s118_s28 = scalar_lea.hbm %s263_s0, 128 }
  0x14   :  { %p119_p8 = scmp.ne.s32.totalorder %s263_s0, %s118_s28  ;;  %p122_p9 = scmp.lt.u32.totalorder %s118_s28, %s263_s0 }
  0x16   :  { %p124_p10 = pnand %p122_p9, %p119_p8 }
  0x18   :  { %127 = shalt.err (!%p124_p10)
}
  0x19   :  { %s128_s6 = scalar_lea.vmem %s18_s15, 128  ;;  %p133_p12 = scmp.lt.s32.totalorder %s18_s15, %s18_s15 }
  0x1a   :  { %p129_p11 = scmp.ne.s32.totalorder %s18_s15, %s128_s6  ;;  %p134_p13 = scmp.lt.s32.totalorder %s128_s6, %s128_s6 }
  0x1c   :  { %p135_p0 = por %p134_p13, %p133_p12 }
  0x1e   :  { %p136_p1 = pnand %p135_p0, %p129_p11 }
  0x20   :  { %139 = shalt.err (!%p136_p1)
}
  0x21   :  { %20 = dma.hbm_to_vmem [thread:$0]  %s263_s0, 128, %s18_s15, [#allocation3]  }
  0x22   :  { %s192_s8 = smov [#allocation7]   ;;  %s140_s12 = scalar_lea.hbm %s265_s2, 16 }
  0x23   :  { %s37_s9 = sshll.u32 %s192_s8, 4  ;;  %p141_p2 = scmp.ne.s32.totalorder %s265_s2, %s140_s12  ;;  %s38_s9 = int_to_ptr.vmem [resolvable:$true] %s37_s9 }
  0x24   :  { %p144_p3 = scmp.lt.u32.totalorder %s140_s12, %s265_s2 }
  0x26   :  { %p146_p4 = pnand %p144_p3, %p141_p2 }
  0x28   :  { %149 = shalt.err (!%p146_p4)
}
  0x29   :  { %s150_s18 = scalar_lea.vmem %s38_s9, 16  ;;  %s154_s0 = scalar_lea.vmem %s38_s9, 32 }
  0x2a   :  { %p151_p5 = scmp.ne.s32.totalorder %s38_s9, %s150_s18  ;;  %p155_p6 = scmp.lt.s32.totalorder %s38_s9, %s38_s9 }
  0x2b   :  { %p156_p7 = scmp.lt.s32.totalorder %s154_s0, %s150_s18 }
  0x2d   :  { %p157_p8 = por %p156_p7, %p155_p6 }
  0x2f   :  { %p158_p9 = pnand %p157_p8, %p151_p5 }
  0x31   :  { %161 = shalt.err (!%p158_p9)
}
  0x32   :  { %40 = dma.hbm_to_vmem [thread:$0]  %s265_s2, 16, %s38_s9, [#allocation6]  }
  0x33   :  { %184 = dma.done.wait [#allocation3], 128  }
  0x34   :  { %185 = vsyncadd [#allocation3], 4294967168 }
  0x35   :  { %186 = dma.done.wait [#allocation6], 144  }
  0x36   :  { %187 = vsyncadd [#allocation6], 4294967152  ;;  %v193_v0 = vmov 0   ;;  %v51_v1 = vld [vmem:[#allocation5] sm:$0xff]  ;;  %v50_v2 = vld [vmem:[#allocation2] sm:$0xff]  ;;  %s194_s20 = smov [#allocation8]  }
  0x37   :  { %95 = vset.pattern.permute.xlu0 %v193_v0  ;;  %v53_v3 = vadd.f32 0.2, %v50_v2  ;;  %v89_v4 = vld [vmem:[#allocation7] ss:$0 sm:$0xff]  ;;  %s79_s21 = sshll.u32 %s194_s20, 4  ;;  %vm71_vm0 = vcmask 64512   ;;  %s80_s21 = int_to_ptr.vmem [resolvable:$true] %s79_s21 }
  0x38   :  { %56 = vperm.xlu0 %95, %v51_v1   ;;  %s162_s2 = scalar_lea.vmem %s80_s21, 128  ;;  %p167_p11 = scmp.lt.s32.totalorder %s80_s21, %s80_s21 }
  0x39   :  { %v67_v5 = vsub.f32 %v53_v3, %v89_v4  ;;  %p163_p10 = scmp.ne.s32.totalorder %s80_s21, %s162_s2  ;;  %p168_p12 = scmp.lt.s32.totalorder %s162_s2, %s162_s2 }
  0x3b   :  { %v68_v8 = vmax.f32 %v67_v5, 0.0  ;;  %p169_p13 = por %p168_p12, %p167_p11 }
  0x3d   :  { %p170_p0 = pnand %p169_p13, %p163_p10 }
  0xb7   :  { %v57_v6 = vpop.permute.xlu0 %56 }
  0xb8   :  { %v59_v7 = vsub.f32 %v53_v3, %v57_v6 }
  0xba   :  { %v60_v9 = vmax.f32 %v59_v7, 0.0 }
  0xbc   :  { %v69_v10 = vadd.f32 %v68_v8, %v60_v9 }
  0xbe   :  { %72 = vst.msk [vmem:[#allocation8] sm:$0xff] %vm71_vm0, %v69_v10 }
  0xbf   :  { %173 = shalt.err (!%p170_p0)
}
  0xc0   :  { %s174_s24 = scalar_lea.hbm %s266_s3, 128 }
  0xc1   :  { %p175_p1 = scmp.ne.s32.totalorder %s266_s3, %s174_s24  ;;  %p178_p2 = scmp.lt.u32.totalorder %s174_s24, %s266_s3 }
  0xc3   :  { %p180_p3 = pnand %p178_p2, %p175_p1 }
  0xc5   :  { %183 = shalt.err (!%p180_p3)
}
  0xc6   :  { %82 = dma.vmem_to_hbm [thread:$0]  %s80_s21, 128, %s266_s3, [#allocation4]  }
  0xc7   :  { %188 = dma.done.wait [#allocation4], 128  }
  0xc8   :  { %189 = vsyncadd [#allocation4], 4294967168 }
  0xc9   :  { %86 = vsyncpa [#allocation3], 1 }
  0xca   :  { %87 = vsyncpa [#allocation6], 1 }
  0xcb   :  { %88 = vsyncpa [#allocation4], 1 }

</bundles_post_ra>
